<compile_context>
chip_gen: v7x
topology: tpu7x:2x2x1
jax: 0.10.0
libtpu: 0.0.40
codegen_flags: <defaults>
</compile_context>

<pallas_src>
import jax
import jax.numpy as jnp
from jax.experimental import pallas as pl
from jax.experimental.pallas import tpu as pltpu

K = 267        # fc1 in_features
N = 2          # fc1 out_features (classes)
K_PAD = 384    # 267 rounded up to a multiple of 128 (3 * 128)


def nn1_kernel(x_ref, w_ref, b_ref, o_ref):
    # fc1: bf16 inputs on the MXU, f32 accumulation.
    z = jnp.dot(x_ref[...], w_ref[...],
                preferred_element_type=jnp.float32)          # (TM, 2) f32
    # bias add + ReLU in f32 (VPU).
    z = jnp.maximum(z + b_ref[...], 0.0)
    # Numerically stable 2-class log_softmax via static column slices
    # (elementwise VPU ops + EUP exp/log; no cross-lane reduce).
    z0 = z[:, 0:1]
    z1 = z[:, 1:2]
    m = jnp.maximum(z0, z1)
    lse = m + jnp.log(jnp.exp(z0 - m) + jnp.exp(z1 - m))     # (TM, 1)
    o_ref[...] = (z - lse).astype(o_ref.dtype)               # broadcast over classes


def nn1_forward(x, w1, b1, *, tm=512):
    """x: (B, 267) f32; w1: (267, 2) (= PyTorch weight transposed); b1: (2,)."""
    B = x.shape[0]
    # Choose a batch tile: multiple of 8 rows, capped at `tm`.
    tm = min(tm, max(8, ((B + 7) // 8) * 8))
    B_pad = ((B + tm - 1) // tm) * tm

    # One-time wrapper-side prep: pad batch + K with zeros and cast the two
    # streamed/matmul operands to bf16.  Bias stays f32.
    x_p = jnp.pad(x, ((0, B_pad - B), (0, K_PAD - K))).astype(jnp.bfloat16)
    w_p = jnp.pad(w1, ((0, K_PAD - K), (0, 0))).astype(jnp.bfloat16)
    b_2d = b1.reshape(1, N).astype(jnp.float32)

    out = pl.pallas_call(
        nn1_kernel,
        out_shape=jax.ShapeDtypeStruct((B_pad, N), jnp.float32),
        grid=(B_pad // tm,),
        in_specs=[
            pl.BlockSpec((tm, K_PAD), lambda i: (i, 0)),   # x: streamed per tile
            pl.BlockSpec((K_PAD, N), lambda i: (0, 0)),    # w: VMEM-resident
            pl.BlockSpec((1, N), lambda i: (0, 0)),        # b: VMEM-resident
        ],
        out_specs=pl.BlockSpec((tm, N), lambda i: (i, 0)),
        compiler_params=pltpu.CompilerParams(
            dimension_semantics=("parallel",)),            # megacore on v7x
    )(x_p, w_p, b_2d)
    return out[:B]


def nn1_reference(x, w1, b1):
    z = jnp.maximum(x @ w1 + b1, 0.0)
    return jax.nn.log_softmax(z, axis=1)


if __name__ == "__main__":
    key = jax.random.PRNGKey(0)
    kx, kw, kb = jax.random.split(key, 3)

    batch = 10  # deliberately not a multiple of 8 to exercise the padding path
    lim = 1.0 / jnp.sqrt(267.0)
    x = jax.random.normal(kx, (batch, K), dtype=jnp.float32)
    # Stored directly in (in, out) layout == PyTorch (out, in) weight transposed.
    w1 = jax.random.uniform(kw, (K, N), jnp.float32, -lim, lim)
    b1 = jax.random.uniform(kb, (N,), jnp.float32, -lim, lim)

    out = jax.block_until_ready(nn1_forward(x, w1, b1))
    ref = nn1_reference(x, w1, b1)

    assert out.shape == (batch, N)
    assert bool(jnp.all(jnp.isfinite(out)))
    # bf16 matmul inputs -> compare against the f32 reference with loosened tol.
    assert jnp.allclose(out, ref, atol=3e-2, rtol=3e-2), "mismatch vs reference"

    print("KERNEL_OK")
</pallas_src>

<mosaic_0001>
module attributes {stable_mosaic.version = 11 : i64} {
  func.func @nn1_kernel(%arg0: i32, %arg1: memref<16x384xbf16, #tpu.memory_space<vmem>>, %arg2: memref<384x2xbf16, #tpu.memory_space<vmem>>, %arg3: memref<1x2xf32, #tpu.memory_space<vmem>>, %arg4: memref<16x2xf32, #tpu.memory_space<vmem>>) attributes {dimension_semantics = [#tpu.dimension_semantics<parallel>], iteration_bounds = array<i64: 1>, scalar_prefetch = 0 : i64, scratch_operands = 0 : i64, tpu.core_type = #tpu.core_type<tc>, window_params = [{transform_indices = @transform_0, window_bounds = array<i64: 16, 384>}, {pipeline_mode = #tpu.pipeline_mode<synchronous>, transform_indices = @transform_1, window_bounds = array<i64: 384, 2>}, {pipeline_mode = #tpu.pipeline_mode<synchronous>, transform_indices = @transform_2, window_bounds = array<i64: 1, 2>}, {transform_indices = @transform_3, window_bounds = array<i64: 16, 2>}]} {
    %c0 = arith.constant 0 : index
    %c0_0 = arith.constant 0 : index
    %0 = vector.load %arg1[%c0, %c0_0] : memref<16x384xbf16, #tpu.memory_space<vmem>>, vector<16x384xbf16>
    %c0_1 = arith.constant 0 : index
    %c0_2 = arith.constant 0 : index
    %1 = vector.load %arg2[%c0_1, %c0_2] : memref<384x2xbf16, #tpu.memory_space<vmem>>, vector<384x2xbf16>
    %cst = arith.constant dense<0.000000e+00> : vector<16x2xf32>
    %2 = tpu.matmul %0, %1, %cst {dimension_numbers = #tpu.dot_dimension_numbers<[1], [0], [0], [1], [0, 0, 1, 1], [], []>} : vector<16x384xbf16>, vector<384x2xbf16>, vector<16x2xf32> -> vector<16x2xf32>
    %c0_3 = arith.constant 0 : index
    %c0_4 = arith.constant 0 : index
    %3 = vector.load %arg3[%c0_3, %c0_4] : memref<1x2xf32, #tpu.memory_space<vmem>>, vector<1x2xf32>
    %4 = vector.broadcast %3 : vector<1x2xf32> to vector<16x2xf32>
    %5 = arith.addf %2, %4 : vector<16x2xf32>
    %cst_5 = arith.constant 0.000000e+00 : f32
    %6 = vector.broadcast %cst_5 : f32 to vector<16x2xf32>
    %7 = arith.maximumf %5, %6 : vector<16x2xf32>
    %8 = vector.extract_strided_slice %7 {offsets = [0, 0], sizes = [16, 1], strides = [1, 1]} : vector<16x2xf32> to vector<16x1xf32>
    %9 = vector.extract_strided_slice %7 {offsets = [0, 1], sizes = [16, 1], strides = [1, 1]} : vector<16x2xf32> to vector<16x1xf32>
    %10 = arith.maximumf %8, %9 : vector<16x1xf32>
    %11 = arith.subf %8, %10 : vector<16x1xf32>
    %12 = math.exp %11 : vector<16x1xf32>
    %13 = arith.subf %9, %10 : vector<16x1xf32>
    %14 = math.exp %13 : vector<16x1xf32>
    %15 = arith.addf %12, %14 : vector<16x1xf32>
    %16 = math.log %15 : vector<16x1xf32>
    %17 = arith.addf %10, %16 : vector<16x1xf32>
    %18 = vector.broadcast %17 : vector<16x1xf32> to vector<16x2xf32>
    %19 = arith.subf %7, %18 : vector<16x2xf32>
    %c0_6 = arith.constant 0 : index
    %c0_7 = arith.constant 0 : index
    %20 = vector.load %arg4[%c0_6, %c0_7] : memref<16x2xf32, #tpu.memory_space<vmem>>, vector<16x2xf32>
    tpu.vector_store %arg4[%c0_6, %c0_7], %19 {strides = array<i32>} : memref<16x2xf32, #tpu.memory_space<vmem>>, vector<16x2xf32>,
    return
  }
  func.func @transform_0(%arg0: i32) -> (i32, i32) {
    %c0_i32 = arith.constant 0 : i32
    %c0_i32_0 = arith.constant 0 : i32
    return %arg0, %c0_i32 : i32, i32
  }
  func.func @transform_1(%arg0: i32) -> (i32, i32) {
    %c0_i32 = arith.constant 0 : i32
    %c0_i32_0 = arith.constant 0 : i32
    %c0_i32_1 = arith.constant 0 : i32
    return %c0_i32, %c0_i32_0 : i32, i32
  }
  func.func @transform_2(%arg0: i32) -> (i32, i32) {
    %c0_i32 = arith.constant 0 : i32
    %c0_i32_0 = arith.constant 0 : i32
    %c0_i32_1 = arith.constant 0 : i32
    return %c0_i32, %c0_i32_0 : i32, i32
  }
  func.func @transform_3(%arg0: i32) -> (i32, i32) {
    %c0_i32 = arith.constant 0 : i32
    %c0_i32_0 = arith.constant 0 : i32
    return %arg0, %c0_i32 : i32, i32
  }
}

</mosaic_0001>

<bundles_post_ra>
// kernel: tpu_custom_call.1
= control target key start
LH: loop header
LB: loop body
LE: loop exit
PB: predicated region body
PF: predicated region fallthrough
CT: control target
= control target key end

     0   :  { %v509_v1 = vmov 0.0   ;;  %vm510_vm0 = vmmov 0   ;;  %v513_v57 = vmov 0   ;;  %vm376_vm1 = vcmask 15360   ;;  %s624_s1 = inlined_call_operand.vmem [shape: bf16[384,2], index: 1, kind: input, shape index: {}]   ;;  %s625_s0 = inlined_call_operand.vmem [shape: bf16[16,384], index: 0, kind: input, shape index: {}]   ;;  %s626_s2 = inlined_call_operand.vmem [shape: f32[1,2], index: 2, kind: input, shape index: {}]   ;;  %s627_s3 = inlined_call_operand.vmem [shape: f32[16,2], index: 3, kind: output, shape index: {}]  }
   0x1   :  { %v469_v0 = vld [vmem:[%s624_s1 + $0x40] sm:$0xff]   ;;  %442 = vmatprep.subr.bf16.mxu1 %v509_v1  ;;  %458 = vmatprep.mubr.msk.bf16.mxu1 %vm510_vm0, %v509_v1  ;;  %v472_v4 = vld [vmem:[%s624_s1 + $0x48] sm:$0xff]   ;;  %v475_v7 = vld [vmem:[%s624_s1 + $0x50] sm:$0xff]  }
   0x2   :  { %v470_v2 = vld [vmem:[%s624_s1] sm:$0xff]   ;;  %411 = vmatprep.subr.bf16.mxu0 %v469_v0  ;;  %v473_v5 = vld [vmem:[%s624_s1 + $0x8] sm:$0xff]   ;;  %v476_v8 = vld [vmem:[%s624_s1 + $0x10] sm:$0xff]   ;;  %467 = vset.pattern.permute.xlu0 %v513_v57 }
   0x3   :  { %v471_v3 = vld [vmem:[%s624_s1 + $0x80] sm:$0xff]   ;;  %412 = vmatpush3.bf16.msra.mxu0 %v470_v2  ;;  %v474_v6 = vld [vmem:[%s624_s1 + $0x88] sm:$0xff]   ;;  %v477_v9 = vld [vmem:[%s624_s1 + $0x90] sm:$0xff]   ;;  %468 = vset.pattern.permute.xlu1 %v513_v57 }
   0x4   :  { %443 = vmatpush3.bf16.msra.mxu1 %v471_v3  ;;  %413 = vmatprep.subr.bf16.mxu0 %v472_v4  ;;  %v478_v10 = vld [vmem:[%s624_s1 + $0x58] sm:$0xff]   ;;  %v481_v13 = vld [vmem:[%s624_s1 + $0x60] sm:$0xff]   ;;  %v484_v16 = vld [vmem:[%s624_s1 + $0x68] sm:$0xff]  }
   0x5   :  { %444 = vmatprep.subr.bf16.mxu1 %v509_v1  ;;  %v479_v11 = vld [vmem:[%s624_s1 + $0x18] sm:$0xff]   ;;  %v482_v14 = vld [vmem:[%s624_s1 + $0x20] sm:$0xff]   ;;  %v485_v17 = vld [vmem:[%s624_s1 + $0x28] sm:$0xff]  }
   0x6   :  { %v480_v12 = vld [vmem:[%s624_s1 + $0x98] sm:$0xff]   ;;  %v483_v15 = vld [vmem:[%s624_s1 + $0xa0] sm:$0xff]   ;;  %v486_v18 = vld [vmem:[%s624_s1 + $0xa8] sm:$0xff]  }
   0x7   :  { %414 = vmatpush3.bf16.msra.mxu0 %v473_v5  ;;  %v487_v19 = vld [vmem:[%s624_s1 + $0x70] sm:$0xff]   ;;  %v490_v22 = vld [vmem:[%s624_s1 + $0x78] sm:$0xff]   ;;  %v492_v26 = vld [vmem:[%s625_s0] ss:$12 sps:$4 sm:$0xff]  }
   0x8   :  { %445 = vmatpush3.bf16.msra.mxu1 %v474_v6  ;;  %415 = vmatprep.subr.bf16.mxu0 %v475_v7  ;;  %v488_v20 = vld [vmem:[%s624_s1 + $0x30] sm:$0xff]   ;;  %v491_v24 = vld [vmem:[%s624_s1 + $0x38] sm:$0xff]   ;;  %v383_v30 = vld [vmem:[%s626_s2] ss:$0 sm:$0xff] }
   0x9   :  { %446 = vmatprep.subr.bf16.mxu1 %v509_v1  ;;  %v489_v21 = vld [vmem:[%s624_s1 + $0xb0] sm:$0xff]   ;;  %v495_v25 = vld [vmem:[%s624_s1 + $0xb8] sm:$0xff]   ;;  %s512_s1 = smov 1  }
   0xa   :  { %v494_v23 = vld [vmem:[%s625_s0 + $0x4] ss:$12 sps:$4 sm:$0xff]   ;;  %v496_v27 = vld [vmem:[%s625_s0 + $0x8] ss:$12 sps:$4 sm:$0xff]   ;;  %s511_s0 = smov 127  }
   0xb   :  { %416 = vmatpush3.bf16.msra.mxu0 %v476_v8  ;;  %266 = vmatprep.mubr.bf16.mxu0 %v494_v23 }
   0xc   :  { %447 = vmatpush3.bf16.msra.mxu1 %v477_v9  ;;  %417 = vmatprep.subr.bf16.mxu0 %v478_v10 }
   0xd   :  { %448 = vmatprep.subr.bf16.mxu1 %v509_v1 }
   0xf   :  { %418 = vmatpush3.bf16.msra.mxu0 %v479_v11 }
  0x10   :  { %449 = vmatpush3.bf16.msra.mxu1 %v480_v12  ;;  %419 = vmatprep.subr.bf16.mxu0 %v481_v13 }
  0x11   :  { %450 = vmatprep.subr.bf16.mxu1 %v509_v1 }
  0x13   :  { %420 = vmatpush3.bf16.msra.mxu0 %v482_v14 }
  0x14   :  { %451 = vmatpush3.bf16.msra.mxu1 %v483_v15  ;;  %421 = vmatprep.subr.bf16.mxu0 %v484_v16 }
  0x15   :  { %452 = vmatprep.subr.bf16.mxu1 %v509_v1 }
  0x17   :  { %422 = vmatpush3.bf16.msra.mxu0 %v485_v17 }
  0x18   :  { %453 = vmatpush3.bf16.msra.mxu1 %v486_v18  ;;  %423 = vmatprep.subr.bf16.mxu0 %v487_v19 }
  0x19   :  { %454 = vmatprep.subr.bf16.mxu1 %v509_v1 }
  0x1b   :  { %424 = vmatpush3.bf16.msra.mxu0 %v488_v20 }
  0x1c   :  { %455 = vmatpush3.bf16.msra.mxu1 %v489_v21  ;;  %425 = vmatprep.subr.bf16.mxu0 %v490_v22 }
  0x1d   :  { %456 = vmatprep.subr.bf16.mxu1 %v509_v1 }
  0x1f   :  { %426 = vmatpush3.bf16.msra.mxu0 %v491_v24 }
  0x20   :  { %457 = vmatpush3.bf16.msra.mxu1 %v495_v25 }
  0x22   :  { %267 = vmatmul.mubr.bf16.vlgmr.msra.gmra.mrb[0].mxu0 %v492_v26 }
  0x23   :  { %459 = vmatmul.mubr.bf16.vlgmr.msra.gmra.mrb[0].mxu1 %v496_v27 }
  0xf5   :  { %v427_v28 = vpop.f32.mrb[0].mxu0 }
  0xf6   :  { %v428_v29 = vpop.f32.mrb[1].mxu0  ;;  %v309_v31 = vpop.f32.mrb[0].mxu1 }
  0xf7   :  { %v429_v32 = vadd.f32 %v428_v29, %v427_v28  ;;  %v430_v33 = vpop.f32.mrb[2].mxu0  ;;  %v460_v34 = vpop.f32.mrb[1].mxu1 }
  0xf8   :  { %v431_v35 = vpop.f32.mrb[3].mxu0  ;;  %v312_v36 = vpop.f32.mrb[2].mxu1 }
  0xf9   :  { %v269_v37 = vadd.f32 %v429_v32, %v383_v30  ;;  %v432_v38 = vadd.f32 %v431_v35, %v430_v33  ;;  %v461_v39 = vpop.f32.mrb[3].mxu1 }
  0xfb   :  { %v310_v40 = vadd.f32 %v309_v31, %v269_v37  ;;  %v272_v41 = vadd.f32 %v432_v38, %v383_v30 }
  0xfd   :  { %v316_v42 = vmax.f32 %v310_v40, 0.0  ;;  %v313_v43 = vadd.f32 %v312_v36, %v272_v41 }
  0xff   :  { %320 = vrot.lane.b32.xlu0 %v316_v42, %s511_s0  ;;  %v317_v44 = vmax.f32 %v313_v43, 0.0 }
 0x103   :  { %322 = vrot.lane.b32.xlu0 %v317_v44, %s511_s0 }
 0x171   :  { %v321_v45 = vpop.permute.xlu0 %320 }
 0x172   :  { %v326_v46 = vmax.f32 %v316_v42, %v321_v45 }
 0x174   :  { %336 = vrot.lane.b32.xlu1 %v326_v46, %s512_s1  ;;  %v328_v58 = vsub.f32 %v316_v42, %v326_v46 }
 0x175   :  { %v323_v47 = vpop.permute.xlu0 %322 }
 0x176   :  { %v327_v48 = vmax.f32 %v317_v44, %v323_v47  ;;  %v330_v59 = vmul.f32 1.442695, %v328_v58 }
 0x178   :  { %338 = vrot.lane.b32.xlu1 %v327_v48, %s512_s1  ;;  %v329_v60 = vsub.f32 %v317_v44, %v327_v48 }
 0x17a   :  { %v332_v61 = vmul.f32 1.442695, %v329_v60 }
 0x1e6   :  { %v337_v49 = vpop.permute.xlu1 %336 }
 0x1e7   :  { %v342_v50 = vsub.f32 %v316_v42, %v337_v49 }
 0x1e9   :  { %v344_v51 = vmul.f32 1.442695, %v342_v50 }
 0x1ea   :  { %v339_v52 = vpop.permute.xlu1 %338 }
 0x1eb   :  { %497 = vpow2.f32 %v344_v51  ;;  %v343_v53 = vsub.f32 %v317_v44, %v339_v52 }
 0x1ed   :  { %v346_v54 = vmul.f32 1.442695, %v343_v53 }
 0x1ef   :  { %499 = vpow2.f32 %v346_v54 }
 0x1f0   :  { %501 = vpow2.f32 %v330_v59 }
 0x1f1   :  { %503 = vpow2.f32 %v332_v61 }
 0x1f5   :  { %v498_v55 = vpop.eup %497 }
 0x1f6   :  { %350 = vrot.lane.b32.xlu0 %v498_v55, %s511_s0 }
 0x1f9   :  { %v500_v56 = vpop.eup %499 }
 0x1fa   :  { %352 = vrot.lane.b32.xlu1 %v500_v56, %s511_s0  ;;  %v502_v62 = vpop.eup %501 }
 0x1fb   :  { %v504_v1 = vpop.eup %503 }
 0x268   :  { %v351_v63 = vpop.permute.xlu0 %350 }
 0x269   :  { %v356_v0 = vadd.f32 %v502_v62, %v351_v63 }
 0x26b   :  { %505 = vlog2.f32 %v356_v0 }
 0x26c   :  { %v353_v2 = vpop.permute.xlu1 %352 }
 0x26d   :  { %v357_v3 = vadd.f32 %v504_v1, %v353_v2 }
 0x26f   :  { %507 = vlog2.f32 %v357_v3 }
 0x275   :  { %v506_v4 = vpop.eup %505 }
 0x276   :  { %v359_v5 = vmul.f32 0.6931472, %v506_v4 }
 0x278   :  { %v362_v6 = vadd.f32 %v359_v5, %v326_v46 }
 0x279   :  { %v508_v7 = vpop.eup %507 }
 0x27a   :  { %v361_v8 = vmul.f32 0.6931472, %v508_v7  ;;  %366 = vperm.xlu0 %467, %v362_v6  }
 0x27c   :  { %v363_v9 = vadd.f32 %v361_v8, %v327_v48 }
 0x27e   :  { %371 = vperm.xlu1 %468, %v363_v9  }
 0x2f9   :  { %v367_v10 = vpop.permute.xlu0 %366 }
 0x2fa   :  { %v374_v11 = vsub.f32 %v316_v42, %v367_v10 }
 0x2fc   :  { %377 = vst.msk [vmem:[%s627_s3] sm:$0xff] %vm376_vm1, %v374_v11 }
 0x2fd   :  { %v372_v12 = vpop.permute.xlu1 %371 }
 0x2fe   :  { %v375_v13 = vsub.f32 %v317_v44, %v372_v12 }
 0x300   :  { %378 = vst.msk [vmem:[%s627_s3 + $0x8] sm:$0xff] %vm376_vm1, %v375_v13 }

</bundles_post_ra>
